<compile_context>
chip_gen: v6e
topology: v6e:2x2x1
jax: 0.10.0
libtpu: 0.0.40
codegen_flags: <defaults>
</compile_context>

<pallas_src>
import jax
import jax.numpy as jnp
from jax.experimental import pallas as pl
from jax.experimental.pallas import tpu as pltpu


LANE = 128  # TPU lane width


def _round_up(a, m):
    return (a + m - 1) // m * m


def coxnn_kernel(x_ref, w1_ref, b1_ref, w2_ref, b2_ref,
                 w3_ref, b3_ref, w4_ref, o_ref):
    # Layer 1: Linear + ReLU   (bf16 operands, f32 accumulate on the MXU)
    h = jnp.dot(x_ref[...], w1_ref[...], preferred_element_type=jnp.float32)
    h = jnp.maximum(h + b1_ref[...], 0.0)
    # Layer 2: Linear + ReLU   (128 x 128, zero-padded; pads contribute exact zeros)
    h = jnp.dot(h.astype(jnp.bfloat16), w2_ref[...],
                preferred_element_type=jnp.float32)
    h = jnp.maximum(h + b2_ref[...], 0.0)
    # Layer 3: Linear + ReLU
    h = jnp.dot(h.astype(jnp.bfloat16), w3_ref[...],
                preferred_element_type=jnp.float32)
    h = jnp.maximum(h + b3_ref[...], 0.0)
    # Layer 4: contract the lane (feature) dim of h against the single padded
    # w4 row: (1, H) x (TILE_B, H) -> (1, TILE_B). Transposed-RHS contraction
    # (same form as q @ k.T in flash attention) is a native MXU path — no XLU
    # transpose of h — and yields a lane-dense row for an unmasked store.
    # fc4 bias is added in the wrapper.
    row = jax.lax.dot_general(
        w4_ref[...], h.astype(jnp.bfloat16),
        dimension_numbers=(((1,), (1,)), ((), ())),
        preferred_element_type=jnp.float32)
    o_ref[0] = row.astype(o_ref.dtype)


def pad_params(params, h_pad):
    """Zero-pad hidden dims to `h_pad` lanes; keep D_in (K of layer 1) as-is.
    Weights (already stored (in, out) == W.T of torch) are cast to bf16 for
    single-pass MXU; biases stay f32 (added to the f32 accumulator)."""
    d_in = params["w1"].shape[0]

    def pad2(a, shape, dtype):
        out = jnp.zeros(shape, dtype)
        return out.at[:a.shape[0], :a.shape[1]].set(a.astype(dtype))

    return {
        "w1": pad2(params["w1"], (d_in, h_pad), jnp.bfloat16),
        "b1": pad2(params["b1"], (1, h_pad), jnp.float32),
        "w2": pad2(params["w2"], (h_pad, h_pad), jnp.bfloat16),
        "b2": pad2(params["b2"], (1, h_pad), jnp.float32),
        "w3": pad2(params["w3"], (h_pad, h_pad), jnp.bfloat16),
        "b3": pad2(params["b3"], (1, h_pad), jnp.float32),
        # fc4 weight (HS[2], 1) -> a single lane-padded row (1, h_pad)
        "w4row": pad2(params["w4"].T, (1, h_pad), jnp.bfloat16),
    }


def coxnn_forward(x, params, tile_b_max=4096):
    """x: (B, D_in) float32.  params: dict of (in,out) weights and (1,out) biases."""
    assert params["w4"].shape[1] == 1, "lane-reduce output path assumes D_out == 1"
    B, d_in = x.shape

    h_pad = _round_up(max(params["w1"].shape[1],
                          params["w2"].shape[1],
                          params["w3"].shape[1]), LANE)
    pp = pad_params(params, h_pad)

    # Batch tiling: TILE_B multiple of 128 (lane-dense output row), big enough to
    # amortize per-step pipeline overhead, and sized so large batches split into
    # >= 2 grid steps (useful for v7x's 2 TensorCores with "parallel" semantics).
    tile_b = max(LANE, min(tile_b_max, _round_up(pl.cdiv(B, 2), LANE)))
    num_tiles = pl.cdiv(B, tile_b)

    # No jnp.pad of x: the last (partial) tile reads undefined rows past B; the
    # corresponding output rows are discarded by the final [:B] slice.
    x_bf16 = x.astype(jnp.bfloat16)

    const2 = lambda i: (0, 0)   # weights/biases: same block every step -> resident
    weight_bytes = sum(int(v.size) * v.dtype.itemsize for v in pp.values())
    cost = pl.CostEstimate(
        flops=2 * num_tiles * tile_b * (d_in * h_pad + 2 * h_pad * h_pad + h_pad),
        transcendentals=0,
        bytes_accessed=B * d_in * 2 + num_tiles * tile_b * 4 + weight_bytes)

    out = pl.pallas_call(
        coxnn_kernel,
        out_shape=jax.ShapeDtypeStruct((num_tiles, 1, tile_b), jnp.float32),
        grid=(num_tiles,),
        in_specs=[
            pl.BlockSpec((tile_b, d_in), lambda i: (i, 0)),   # x: streamed (bf16)
            pl.BlockSpec((d_in, h_pad), const2),              # w1 (resident)
            pl.BlockSpec((1, h_pad), const2),                 # b1
            pl.BlockSpec((h_pad, h_pad), const2),             # w2
            pl.BlockSpec((1, h_pad), const2),                 # b2
            pl.BlockSpec((h_pad, h_pad), const2),             # w3
            pl.BlockSpec((1, h_pad), const2),                 # b3
            pl.BlockSpec((1, h_pad), const2),                 # w4 row
        ],
        out_specs=pl.BlockSpec((1, 1, tile_b), lambda i: (i, 0, 0)),
        compiler_params=pltpu.CompilerParams(
            dimension_semantics=("parallel",),
            vmem_limit_bytes=32 * 1024 * 1024),
        cost_estimate=cost,
    )(x_bf16, pp["w1"], pp["b1"], pp["w2"], pp["b2"], pp["w3"], pp["b3"],
      pp["w4row"])

    # .view(-1, 1) in the PyTorch module; drop batch padding; add fc4 bias here
    # (folded out of the kernel).
    return out.reshape(-1, 1)[:B] + params["b4"]


def init_params(key, d_in, hidden_sizes, d_out):
    """Deterministic init mimicking torch.nn.Linear default (U[-1/sqrt(fan_in), 1/sqrt(fan_in)]).
    Weights stored as (in_features, out_features) == W.T of the PyTorch layout."""
    dims = [d_in] + list(hidden_sizes) + [d_out]
    params = {}
    for i in range(4):
        fan_in, fan_out = dims[i], dims[i + 1]
        key, kw, kb = jax.random.split(key, 3)
        bound = 1.0 / (fan_in ** 0.5)
        params[f"w{i+1}"] = jax.random.uniform(
            kw, (fan_in, fan_out), jnp.float32, minval=-bound, maxval=bound)
        params[f"b{i+1}"] = jax.random.uniform(
            kb, (1, fan_out), jnp.float32, minval=-bound, maxval=bound)
    return params


def coxnn_reference(x, params):
    """Pure-JAX f32 reference for validation (eval-mode forward)."""
    h = jnp.maximum(x @ params["w1"] + params["b1"], 0.0)
    h = jnp.maximum(h @ params["w2"] + params["b2"], 0.0)
    h = jnp.maximum(h @ params["w3"] + params["b3"], 0.0)
    out = h @ params["w4"] + params["b4"]
    return out.reshape(-1, 1)


if __name__ == "__main__":
    # Small shapes consistent with the module: D_in=32, hidden_sizes=[64, 32, 16], D_out=1
    B, D_in, D_out = 8, 32, 1
    hidden_sizes = (64, 32, 16)

    key = jax.random.PRNGKey(0)
    key, kx = jax.random.split(key)
    x = jax.random.normal(kx, (B, D_in), jnp.float32)
    params = init_params(key, D_in, hidden_sizes, D_out)

    pred = jax.block_until_ready(coxnn_forward(x, params))
    ref = coxnn_reference(x, params)

    assert pred.shape == (B, 1), pred.shape
    # bf16 MXU operands (f32 accumulation) vs the pure-f32 reference -> looser tol.
    assert jnp.allclose(pred, ref, atol=3e-2, rtol=3e-2), "mismatch vs reference"

    print("KERNEL_OK")
</pallas_src>

<mosaic_0001>
module attributes {stable_mosaic.version = 11 : i64} {
  func.func @coxnn_kernel(%arg0: i32, %arg1: memref<128x32xbf16, #tpu.memory_space<vmem>>, %arg2: memref<32x128xbf16, #tpu.memory_space<vmem>>, %arg3: memref<1x128xf32, #tpu.memory_space<vmem>>, %arg4: memref<128x128xbf16, #tpu.memory_space<vmem>>, %arg5: memref<1x128xf32, #tpu.memory_space<vmem>>, %arg6: memref<128x128xbf16, #tpu.memory_space<vmem>>, %arg7: memref<1x128xf32, #tpu.memory_space<vmem>>, %arg8: memref<1x128xbf16, #tpu.memory_space<vmem>>, %arg9: memref<1x1x128xf32, #tpu.memory_space<vmem>>) attributes {dimension_semantics = [#tpu.dimension_semantics<parallel>], iteration_bounds = array<i64: 1>, scalar_prefetch = 0 : i64, scratch_operands = 0 : i64, tpu.core_type = #tpu.core_type<tc>, window_params = [{transform_indices = @transform_0, window_bounds = array<i64: 128, 32>}, {pipeline_mode = #tpu.pipeline_mode<synchronous>, transform_indices = @transform_1, window_bounds = array<i64: 32, 128>}, {pipeline_mode = #tpu.pipeline_mode<synchronous>, transform_indices = @transform_2, window_bounds = array<i64: 1, 128>}, {pipeline_mode = #tpu.pipeline_mode<synchronous>, transform_indices = @transform_3, window_bounds = array<i64: 128, 128>}, {pipeline_mode = #tpu.pipeline_mode<synchronous>, transform_indices = @transform_4, window_bounds = array<i64: 1, 128>}, {pipeline_mode = #tpu.pipeline_mode<synchronous>, transform_indices = @transform_5, window_bounds = array<i64: 128, 128>}, {pipeline_mode = #tpu.pipeline_mode<synchronous>, transform_indices = @transform_6, window_bounds = array<i64: 1, 128>}, {pipeline_mode = #tpu.pipeline_mode<synchronous>, transform_indices = @transform_7, window_bounds = array<i64: 1, 128>}, {transform_indices = @transform_8, window_bounds = array<i64: 1, 1, 128>}]} {
    %c0 = arith.constant 0 : index
    %c0_0 = arith.constant 0 : index
    %0 = vector.load %arg1[%c0, %c0_0] : memref<128x32xbf16, #tpu.memory_space<vmem>>, vector<128x32xbf16>
    %c0_1 = arith.constant 0 : index
    %c0_2 = arith.constant 0 : index
    %1 = vector.load %arg2[%c0_1, %c0_2] : memref<32x128xbf16, #tpu.memory_space<vmem>>, vector<32x128xbf16>
    %cst = arith.constant dense<0.000000e+00> : vector<128x128xf32>
    %2 = tpu.matmul %0, %1, %cst {dimension_numbers = #tpu.dot_dimension_numbers<[1], [0], [0], [1], [0, 0, 1, 1], [], []>} : vector<128x32xbf16>, vector<32x128xbf16>, vector<128x128xf32> -> vector<128x128xf32>
    %c0_3 = arith.constant 0 : index
    %c0_4 = arith.constant 0 : index
    %3 = vector.load %arg3[%c0_3, %c0_4] : memref<1x128xf32, #tpu.memory_space<vmem>>, vector<1x128xf32>
    %4 = vector.broadcast %3 : vector<1x128xf32> to vector<128x128xf32>
    %5 = arith.addf %2, %4 : vector<128x128xf32>
    %cst_5 = arith.constant 0.000000e+00 : f32
    %6 = vector.broadcast %cst_5 : f32 to vector<128x128xf32>
    %7 = arith.maximumf %5, %6 : vector<128x128xf32>
    %8 = arith.truncf %7 : vector<128x128xf32> to vector<128x128xbf16>
    %c0_6 = arith.constant 0 : index
    %c0_7 = arith.constant 0 : index
    %9 = vector.load %arg4[%c0_6, %c0_7] : memref<128x128xbf16, #tpu.memory_space<vmem>>, vector<128x128xbf16>
    %cst_8 = arith.constant dense<0.000000e+00> : vector<128x128xf32>
    %10 = tpu.matmul %8, %9, %cst_8 {dimension_numbers = #tpu.dot_dimension_numbers<[1], [0], [0], [1], [0, 0, 1, 1], [], []>} : vector<128x128xbf16>, vector<128x128xbf16>, vector<128x128xf32> -> vector<128x128xf32>
    %c0_9 = arith.constant 0 : index
    %c0_10 = arith.constant 0 : index
    %11 = vector.load %arg5[%c0_9, %c0_10] : memref<1x128xf32, #tpu.memory_space<vmem>>, vector<1x128xf32>
    %12 = vector.broadcast %11 : vector<1x128xf32> to vector<128x128xf32>
    %13 = arith.addf %10, %12 : vector<128x128xf32>
    %cst_11 = arith.constant 0.000000e+00 : f32
    %14 = vector.broadcast %cst_11 : f32 to vector<128x128xf32>
    %15 = arith.maximumf %13, %14 : vector<128x128xf32>
    %16 = arith.truncf %15 : vector<128x128xf32> to vector<128x128xbf16>
    %c0_12 = arith.constant 0 : index
    %c0_13 = arith.constant 0 : index
    %17 = vector.load %arg6[%c0_12, %c0_13] : memref<128x128xbf16, #tpu.memory_space<vmem>>, vector<128x128xbf16>
    %cst_14 = arith.constant dense<0.000000e+00> : vector<128x128xf32>
    %18 = tpu.matmul %16, %17, %cst_14 {dimension_numbers = #tpu.dot_dimension_numbers<[1], [0], [0], [1], [0, 0, 1, 1], [], []>} : vector<128x128xbf16>, vector<128x128xbf16>, vector<128x128xf32> -> vector<128x128xf32>
    %c0_15 = arith.constant 0 : index
    %c0_16 = arith.constant 0 : index
    %19 = vector.load %arg7[%c0_15, %c0_16] : memref<1x128xf32, #tpu.memory_space<vmem>>, vector<1x128xf32>
    %20 = vector.broadcast %19 : vector<1x128xf32> to vector<128x128xf32>
    %21 = arith.addf %18, %20 : vector<128x128xf32>
    %cst_17 = arith.constant 0.000000e+00 : f32
    %22 = vector.broadcast %cst_17 : f32 to vector<128x128xf32>
    %23 = arith.maximumf %21, %22 : vector<128x128xf32>
    %c0_18 = arith.constant 0 : index
    %c0_19 = arith.constant 0 : index
    %24 = vector.load %arg8[%c0_18, %c0_19] : memref<1x128xbf16, #tpu.memory_space<vmem>>, vector<1x128xbf16>
    %25 = arith.truncf %23 : vector<128x128xf32> to vector<128x128xbf16>
    %cst_20 = arith.constant dense<0.000000e+00> : vector<1x128xf32>
    %26 = tpu.matmul %24, %25, %cst_20 {dimension_numbers = #tpu.dot_dimension_numbers<[1], [1], [0], [0], [0, 0, 1, 0], [], []>} : vector<1x128xbf16>, vector<128x128xbf16>, vector<1x128xf32> -> vector<1x128xf32>
    %c0_21 = arith.constant 0 : index
    %c0_22 = arith.constant 0 : index
    %c0_23 = arith.constant 0 : index
    %27 = vector.load %arg9[%c0_21, %c0_22, %c0_23] : memref<1x1x128xf32, #tpu.memory_space<vmem>>, vector<1x1x128xf32>
    %28 = vector.shape_cast %27 : vector<1x1x128xf32> to vector<1x128xf32>
    %29 = vector.shape_cast %26 : vector<1x128xf32> to vector<1x1x128xf32>
    tpu.vector_store %arg9[%c0_21, %c0_22, %c0_23], %29 {strides = array<i32>} : memref<1x1x128xf32, #tpu.memory_space<vmem>>, vector<1x1x128xf32>,
    return
  }
  func.func @transform_0(%arg0: i32) -> (i32, i32) {
    %c0_i32 = arith.constant 0 : i32
    %c0_i32_0 = arith.constant 0 : i32
    return %arg0, %c0_i32 : i32, i32
  }
  func.func @transform_1(%arg0: i32) -> (i32, i32) {
    %c0_i32 = arith.constant 0 : i32
    %c0_i32_0 = arith.constant 0 : i32
    %c0_i32_1 = arith.constant 0 : i32
    return %c0_i32, %c0_i32_0 : i32, i32
  }
  func.func @transform_2(%arg0: i32) -> (i32, i32) {
    %c0_i32 = arith.constant 0 : i32
    %c0_i32_0 = arith.constant 0 : i32
    %c0_i32_1 = arith.constant 0 : i32
    return %c0_i32, %c0_i32_0 : i32, i32
  }
  func.func @transform_3(%arg0: i32) -> (i32, i32) {
    %c0_i32 = arith.constant 0 : i32
    %c0_i32_0 = arith.constant 0 : i32
    %c0_i32_1 = arith.constant 0 : i32
    return %c0_i32, %c0_i32_0 : i32, i32
  }
  func.func @transform_4(%arg0: i32) -> (i32, i32) {
    %c0_i32 = arith.constant 0 : i32
    %c0_i32_0 = arith.constant 0 : i32
    %c0_i32_1 = arith.constant 0 : i32
    return %c0_i32, %c0_i32_0 : i32, i32
  }
  func.func @transform_5(%arg0: i32) -> (i32, i32) {
    %c0_i32 = arith.constant 0 : i32
    %c0_i32_0 = arith.constant 0 : i32
    %c0_i32_1 = arith.constant 0 : i32
    return %c0_i32, %c0_i32_0 : i32, i32
  }
  func.func @transform_6(%arg0: i32) -> (i32, i32) {
    %c0_i32 = arith.constant 0 : i32
    %c0_i32_0 = arith.constant 0 : i32
    %c0_i32_1 = arith.constant 0 : i32
    return %c0_i32, %c0_i32_0 : i32, i32
  }
  func.func @transform_7(%arg0: i32) -> (i32, i32) {
    %c0_i32 = arith.constant 0 : i32
    %c0_i32_0 = arith.constant 0 : i32
    %c0_i32_1 = arith.constant 0 : i32
    return %c0_i32, %c0_i32_0 : i32, i32
  }
  func.func @transform_8(%arg0: i32) -> (i32, i32, i32) {
    %c0_i32 = arith.constant 0 : i32
    %c0_i32_0 = arith.constant 0 : i32
    %c0_i32_1 = arith.constant 0 : i32
    return %arg0, %c0_i32, %c0_i32_0 : i32, i32, i32
  }
}

</mosaic_0001>

<bundles_post_ra>
// kernel: tpu_custom_call.1
= control target key start
LH: loop header
LB: loop body
LE: loop exit
PB: predicated region body
PF: predicated region fallthrough
CT: control target
= control target key end

     0   :  { %13 = vsyncpa [#allocation3], 0  ;;  %s1199_s0 = inlined_call_operand.hbm [shape: bf16[8,32], index: 0, kind: input, shape index: {}]   ;;  %s1200_s1 = inlined_call_operand.hbm [shape: bf16[32,128], index: 1, kind: input, shape index: {}]   ;;  %s1201_s2 = inlined_call_operand.vmem [shape: f32[1,128], index: 2, kind: input, shape index: {}]   ;;  %s1202_s3 = inlined_call_operand.hbm [shape: bf16[128,128], index: 3, kind: input, shape index: {}]   ;;  %s1203_s4 = inlined_call_operand.vmem [shape: f32[1,128], index: 4, kind: input, shape index: {}]   ;;  %s1204_s5 = inlined_call_operand.hbm [shape: bf16[128,128], index: 5, kind: input, shape index: {}]   ;;  %s1205_s6 = inlined_call_operand.vmem [shape: f32[1,128], index: 6, kind: input, shape index: {}]   ;;  %s1206_s7 = inlined_call_operand.vmem [shape: bf16[1,128], index: 7, kind: input, shape index: {}]   ;;  %s1207_s8 = inlined_call_operand.hbm [shape: f32[1,1,128], index: 8, kind: output, shape index: {}]  }
   0x1   :  { %14 = vsyncpa [#allocation6], 0 }
   0x2   :  { %15 = vsyncpa [#allocation9], 0 }
   0x3   :  { %16 = vsyncpa [#allocation4], 0 }
   0x4   :  { %21 = vsyncadd [#allocation3], 960  ;;  %s1089_s27 = smov [#allocation5]   ;;  %s1090_s29 = smov [#allocation2]  }
   0x5   :  { %s34_s28 = sshll.u32 %s1089_s27, 4  ;;  %s22_s30 = sshll.u32 %s1090_s29, 4  ;;  %s35_s28 = int_to_ptr.vmem [resolvable:$true] %s34_s28  ;;  %s23_s30 = int_to_ptr.vmem [resolvable:$true] %s22_s30 }
   0x6   :  { %s989_s9 = scalar_lea.vmem %s35_s28, 256  ;;  %p994_p1 = scmp.lt.s32.totalorder %s35_s28, %s35_s28 }
   0x7   :  { %p990_p0 = scmp.ne.s32.totalorder %s35_s28, %s989_s9  ;;  %p995_p2 = scmp.lt.s32.totalorder %s989_s9, %s989_s9 }
   0x9   :  { %p996_p3 = por %p995_p2, %p994_p1 }
   0xb   :  { %p997_p4 = pnand %p996_p3, %p990_p0 }
   0xd   :  { %1000 = shalt.err (!%p997_p4)
}
   0xe   :  { %s1091_s10 = smov 64   ;;  %s1092_s11 = smov 4  }
   0xf   :  { %40 = dma.hbm_to_vmem [thread:$0]  %s1200_s1, 256, %s35_s28, [#allocation6], %s1091_s10, %s1091_s10, %s1092_s11  }
  0x10   :  { %s1009_s14 = scalar_lea.vmem %s23_s30, 64  ;;  %s1013_s15 = scalar_lea.vmem %s23_s30, 1024 }
  0x11   :  { %p1010_p5 = scmp.ne.s32.totalorder %s23_s30, %s1009_s14  ;;  %p1014_p6 = scmp.lt.s32.totalorder %s23_s30, %s23_s30 }
  0x12   :  { %p1015_p7 = scmp.lt.s32.totalorder %s1013_s15, %s1009_s14 }
  0x14   :  { %p1016_p8 = por %p1015_p7, %p1014_p6 }
  0x16   :  { %p1017_p9 = pnand %p1016_p8, %p1010_p5 }
  0x18   :  { %1020 = shalt.err (!%p1017_p9)
}
  0x19   :  { %28 = dma.hbm_to_vmem [thread:$0]  %s1199_s0, 64, %s23_s30, [#allocation3], %s1091_s10, %s1091_s10, %s1092_s11  }
  0x1a   :  { %s1093_s18 = smov [#allocation7]   ;;  %s1094_s20 = smov [#allocation8]  }
  0x1b   :  { %s48_s19 = sshll.u32 %s1093_s18, 4  ;;  %s62_s21 = sshll.u32 %s1094_s20, 4  ;;  %s49_s19 = int_to_ptr.vmem [resolvable:$true] %s48_s19  ;;  %s63_s21 = int_to_ptr.vmem [resolvable:$true] %s62_s21 }
  0x1c   :  { %s1029_s1 = scalar_lea.vmem %s49_s19, 1024  ;;  %p1034_p11 = scmp.lt.s32.totalorder %s49_s19, %s49_s19 }
  0x1d   :  { %p1030_p10 = scmp.ne.s32.totalorder %s49_s19, %s1029_s1  ;;  %p1035_p12 = scmp.lt.s32.totalorder %s1029_s1, %s1029_s1 }
  0x1f   :  { %p1036_p13 = por %p1035_p12, %p1034_p11 }
  0x21   :  { %p1037_p0 = pnand %p1036_p13, %p1030_p10 }
  0x23   :  { %1040 = shalt.err (!%p1037_p0)
}
  0x24   :  { %54 = dma.hbm_to_vmem [thread:$0]  %s1202_s3, 1024, %s49_s19, [#allocation6], %s1091_s10, %s1091_s10, %s1092_s11  }
  0x25   :  { %s1049_s0 = scalar_lea.vmem %s63_s21, 1024  ;;  %p1054_p2 = scmp.lt.s32.totalorder %s63_s21, %s63_s21 }
  0x26   :  { %p1050_p1 = scmp.ne.s32.totalorder %s63_s21, %s1049_s0  ;;  %p1055_p3 = scmp.lt.s32.totalorder %s1049_s0, %s1049_s0 }
  0x28   :  { %p1056_p4 = por %p1055_p3, %p1054_p2 }
  0x2a   :  { %p1057_p5 = pnand %p1056_p4, %p1050_p1 }
  0x2c   :  { %1060 = shalt.err (!%p1057_p5)
}
  0x2d   :  { %68 = dma.hbm_to_vmem [thread:$0]  %s1204_s5, 1024, %s63_s21, [#allocation9], %s1091_s10, %s1091_s10, %s1092_s11  }
  0x2e   :  { %1081 = dma.done.wait [#allocation3], 1024  }
  0x2f   :  { %1082 = vsyncadd [#allocation3], 4294966272 }
  0x30   :  { %1083 = dma.done.wait [#allocation6], 1280  }
  0x31   :  { %1084 = vsyncadd [#allocation6], 4294966016 }
  0x32   :  { %1085 = dma.done.wait [#allocation9], 1024  }
  0x33   :  { %1086 = vsyncadd [#allocation9], 4294966272  ;;  %v955_v0 = vld [vmem:[#allocation5 + $0x8] sm:$0xff]   ;;  %v956_v1 = vld [vmem:[#allocation5] sm:$0xff]   ;;  %vm165_vm0 = vcmask 261120   ;;  %vm1096_vm1 = vmmov 0  }
  0x34   :  { %842 = vmatprep.subr.bf16.mxu0 %v955_v0  ;;  %v957_v2 = vld [vmem:[#allocation2] sm:$0xff]   ;;  %v958_v3 = vld [vmem:[#allocation2 + $0x8] sm:$0xff]   ;;  %v959_v4 = vld [vmem:[#allocation2 + $0x10] sm:$0xff]   ;;  %s1097_s29 = smov [#allocation10]  }
  0x35   :  { %843 = vmatpush3.bf16.msra.mxu0 %v955_v0  ;;  %846 = vmatprep.mubr.msk.bf16.mxu0 %vm165_vm0, %v957_v2  ;;  %v965_v5 = vld [vmem:[#allocation7 + $0x38] sm:$0xff]   ;;  %v966_v6 = vld [vmem:[#allocation7 + $0x30] sm:$0xff]   ;;  %v960_v7 = vld [vmem:[#allocation2 + $0x18] sm:$0xff]   ;;  %s743_s30 = sshll.u32 %s1097_s29, 4  ;;  %s744_s30 = int_to_ptr.vmem [resolvable:$true] %s743_s30 }
  0x36   :  { %844 = vmatprep.subr.bf16.mxu0 %v956_v1  ;;  %862 = vmatprep.subr.bf16.mxu1 %v965_v5  ;;  %v961_v8 = vld [vmem:[#allocation2 + $0x20] sm:$0xff]   ;;  %v967_v9 = vld [vmem:[#allocation7 + $0x28] sm:$0xff]   ;;  %v968_v10 = vld [vmem:[#allocation7 + $0x20] sm:$0xff]   ;;  %s1061_s9 = scalar_lea.vmem %s744_s30, 16  ;;  %s1065_s10 = scalar_lea.vmem %s744_s30, 32 }
  0x37   :  { %863 = vmatpush3.bf16.msra.mxu1 %v965_v5  ;;  %v962_v11 = vld [vmem:[#allocation2 + $0x28] sm:$0xff]   ;;  %v963_v13 = vld [vmem:[#allocation2 + $0x30] sm:$0xff]   ;;  %v964_v14 = vld [vmem:[#allocation2 + $0x38] sm:$0xff]   ;;  %p1062_p6 = scmp.ne.s32.totalorder %s744_s30, %s1061_s9  ;;  %p1066_p7 = scmp.lt.s32.totalorder %s744_s30, %s744_s30 }
  0x38   :  { %864 = vmatprep.subr.bf16.mxu1 %v966_v6  ;;  %v969_v12 = vld [vmem:[#allocation7 + $0x18] sm:$0xff]   ;;  %v970_v15 = vld [vmem:[#allocation7 + $0x10] sm:$0xff]   ;;  %v971_v16 = vld [vmem:[#allocation7 + $0x8] sm:$0xff]   ;;  %p1067_p8 = scmp.lt.s32.totalorder %s1065_s10, %s1061_s9 }
  0x39   :  { %845 = vmatpush3.bf16.msra.mxu0 %v956_v1  ;;  %v972_v17 = vld [vmem:[#allocation7] sm:$0xff]   ;;  %v973_v18 = vld [vmem:[#allocation8 + $0x38] sm:$0xff]   ;;  %v974_v19 = vld [vmem:[#allocation8 + $0x30] sm:$0xff]  }
  0x3a   :  { %894 = vmatprep.subr.bf16.mxu0 %v973_v18  ;;  %v975_v20 = vld [vmem:[#allocation8 + $0x28] sm:$0xff]   ;;  %v976_v21 = vld [vmem:[#allocation8 + $0x20] sm:$0xff]   ;;  %v977_v22 = vld [vmem:[#allocation8 + $0x18] sm:$0xff]   ;;  %p1068_p9 = por %p1067_p8, %p1066_p7 }
  0x3b   :  { %865 = vmatpush3.bf16.msra.mxu1 %v966_v6  ;;  %v754_v25 = vld [vmem:[%s1201_s2] ss:$0 sm:$0xff] }
  0x3c   :  { %847 = vmatmul.mubr.msk.bf16.vlgmr.msra.gmra.mxu0 %vm165_vm0, %v958_v3  ;;  %866 = vmatprep.subr.bf16.mxu1 %v967_v9  ;;  %p1069_p10 = pnand %p1068_p9, %p1062_p6 }
  0x3d   :  { %850 = vmatprep.mubr.msk.bf16.mxu0 %vm165_vm0, %v959_v4  ;;  %895 = vmatpush3.bf16.msra.mxu0 %v973_v18  ;;  %v980_v18 = vld [vmem:[#allocation8] sm:$0xff]  }
  0x3e   :  { %896 = vmatprep.subr.bf16.mxu0 %v974_v19 }
  0x3f   :  { %867 = vmatpush3.bf16.msra.mxu1 %v967_v9 }
  0x40   :  { %868 = vmatprep.subr.bf16.mxu1 %v968_v10 }
  0x41   :  { %897 = vmatpush3.bf16.msra.mxu0 %v974_v19 }
  0x42   :  { %898 = vmatprep.subr.bf16.mxu0 %v975_v20 }
  0x43   :  { %869 = vmatpush3.bf16.msra.mxu1 %v968_v10 }
  0x44   :  { %851 = vmatmul.mubr.msk.bf16.gmra.mxu0 %vm165_vm0, %v960_v7  ;;  %870 = vmatprep.subr.bf16.mxu1 %v969_v12 }
  0x45   :  { %854 = vmatprep.mubr.msk.bf16.mxu0 %vm165_vm0, %v961_v8  ;;  %899 = vmatpush3.bf16.msra.mxu0 %v975_v20 }
  0x46   :  { %900 = vmatprep.subr.bf16.mxu0 %v976_v21 }
  0x47   :  { %871 = vmatpush3.bf16.msra.mxu1 %v969_v12 }
  0x48   :  { %872 = vmatprep.subr.bf16.mxu1 %v970_v15 }
  0x49   :  { %901 = vmatpush3.bf16.msra.mxu0 %v976_v21  ;;  %v773_v21 = vld [vmem:[%s1203_s4] ss:$0 sm:$0xff] }
  0x4a   :  { %902 = vmatprep.subr.bf16.mxu0 %v977_v22 }
  0x4b   :  { %873 = vmatpush3.bf16.msra.mxu1 %v970_v15 }
  0x4c   :  { %855 = vmatmul.mubr.msk.bf16.gmra.mxu0 %vm165_vm0, %v962_v11  ;;  %874 = vmatprep.subr.bf16.mxu1 %v971_v16 }
  0x4d   :  { %858 = vmatprep.mubr.msk.bf16.mxu0 %vm165_vm0, %v963_v13  ;;  %903 = vmatpush3.bf16.msra.mxu0 %v977_v22 }
  0x4f   :  { %875 = vmatpush3.bf16.msra.mxu1 %v971_v16  ;;  %v978_v16 = vld [vmem:[#allocation8 + $0x10] sm:$0xff]  }
  0x50   :  { %876 = vmatprep.subr.bf16.mxu1 %v972_v17  ;;  %904 = vmatprep.subr.bf16.mxu0 %v978_v16 }
  0x51   :  { %905 = vmatpush3.bf16.msra.mxu0 %v978_v16 }
  0x53   :  { %877 = vmatpush3.bf16.msra.mxu1 %v972_v17  ;;  %v979_v17 = vld [vmem:[#allocation8 + $0x8] sm:$0xff]  }
  0x54   :  { %859 = vmatmul.mubr.msk.bf16.gmra.mxu0 %vm165_vm0, %v964_v14  ;;  %906 = vmatprep.subr.bf16.mxu0 %v979_v17 }
  0x55   :  { %907 = vmatpush3.bf16.msra.mxu0 %v979_v17 }
  0x56   :  { %908 = vmatprep.subr.bf16.mxu0 %v980_v18 }
  0x59   :  { %909 = vmatpush3.bf16.msra.mxu0 %v980_v18 }
  0xfc   :  { %v848_v23 = vpop.f32.mrf.mxu0 }
  0xfd   :  { %v233_v29 = vadd.f32 %v848_v23, %v754_v25 }
  0xfe   :  { %v224_v24 = vpop.f32.mrf.mxu0 }
  0xff   :  { %v225_v27 = vadd.f32 %v754_v25, %v224_v24  ;;  %v289_v36 = vmax.f32 %v233_v29, 0.0 }
 0x100   :  { %v849_v26 = vpop.f32.mrf.mxu0 }
 0x101   :  { %v236_v28 = vadd.f32 %v849_v26, %v754_v25  ;;  %v287_v34 = vmax.f32 %v225_v27, 0.0 }
 0x102   :  { %v227_v30 = vpop.f32.mrf.mxu0 }
 0x103   :  { %v228_v31 = vadd.f32 %v754_v25, %v227_v30  ;;  %v290_v32 = vmax.f32 %v236_v28, 0.0 }
 0x104   :  { %v852_v33 = vpop.f32.mrf.mxu0 }
 0x105   :  { %v288_v35 = vmax.f32 %v228_v31, 0.0  ;;  %v304_v39 = vpack.c.bf16 %v290_v32, %v289_v36  ;;  %v249_v43 = vadd.f32 %v852_v33, %v754_v25 }
 0x106   :  { %v240_v37 = vpop.f32.mrf.mxu0 }
 0x107   :  { %v303_v38 = vpack.c.bf16 %v288_v35, %v287_v34  ;;  %v241_v41 = vadd.f32 %v754_v25, %v240_v37  ;;  %v293_v50 = vmax.f32 %v249_v43, 0.0 }
 0x108   :  { %v853_v40 = vpop.f32.mrf.mxu0 }
 0x109   :  { %v252_v42 = vadd.f32 %v853_v40, %v754_v25  ;;  %878 = vmatprep.mubr.bf16.mxu1 %v303_v38  ;;  %v291_v48 = vmax.f32 %v241_v41, 0.0 }
 0x10a   :  { %v243_v44 = vpop.f32.mrf.mxu0  ;;  %879 = vmatmul.mubr.bf16.vlgmr.msra.gmra.mxu1 %v304_v39 }
 0x10b   :  { %v244_v45 = vadd.f32 %v754_v25, %v243_v44  ;;  %v294_v46 = vmax.f32 %v252_v42, 0.0 }
 0x10c   :  { %v856_v47 = vpop.f32.mrf.mxu0 }
 0x10d   :  { %v292_v49 = vmax.f32 %v244_v45, 0.0  ;;  %v306_v53 = vpack.c.bf16 %v294_v46, %v293_v50  ;;  %v265_v57 = vadd.f32 %v856_v47, %v754_v25 }
 0x10e   :  { %v256_v51 = vpop.f32.mrf.mxu0 }
 0x10f   :  { %v305_v52 = vpack.c.bf16 %v292_v49, %v291_v48  ;;  %v257_v55 = vadd.f32 %v754_v25, %v256_v51  ;;  %v297_v0 = vmax.f32 %v265_v57, 0.0 }
 0x110   :  { %v857_v54 = vpop.f32.mrf.mxu0 }
 0x111   :  { %v268_v56 = vadd.f32 %v857_v54, %v754_v25  ;;  %882 = vmatprep.mubr.bf16.mxu1 %v305_v52  ;;  %v295_v62 = vmax.f32 %v257_v55, 0.0 }
 0x112   :  { %v259_v58 = vpop.f32.mrf.mxu0  ;;  %883 = vmatmul.mubr.bf16.gmra.mxu1 %v306_v53 }
 0x113   :  { %v260_v59 = vadd.f32 %v754_v25, %v259_v58  ;;  %v298_v60 = vmax.f32 %v268_v56, 0.0 }
 0x114   :  { %v860_v61 = vpop.f32.mrf.mxu0 }
 0x115   :  { %v296_v63 = vmax.f32 %v260_v59, 0.0  ;;  %v308_v3 = vpack.c.bf16 %v298_v60, %v297_v0  ;;  %v281_v7 = vadd.f32 %v860_v61, %v754_v25 }
 0x116   :  { %v272_v1 = vpop.f32.mrf.mxu0 }
 0x117   :  { %v307_v2 = vpack.c.bf16 %v296_v63, %v295_v62  ;;  %v273_v5 = vadd.f32 %v754_v25, %v272_v1  ;;  %v301_v13 = vmax.f32 %v281_v7, 0.0 }
 0x118   :  { %v861_v4 = vpop.f32.mrf.mxu0 }
 0x119   :  { %v284_v6 = vadd.f32 %v861_v4, %v754_v25  ;;  %886 = vmatprep.mubr.bf16.mxu1 %v307_v2  ;;  %v299_v11 = vmax.f32 %v273_v5, 0.0 }
 0x11a   :  { %v275_v8 = vpop.f32.mrf.mxu0  ;;  %887 = vmatmul.mubr.bf16.gmra.mxu1 %v308_v3 }
 0x11b   :  { %v276_v9 = vadd.f32 %v754_v25, %v275_v8  ;;  %v302_v10 = vmax.f32 %v284_v6, 0.0 }
 0x11d   :  { %v300_v12 = vmax.f32 %v276_v9, 0.0  ;;  %v310_v15 = vpack.c.bf16 %v302_v10, %v301_v13 }
 0x11f   :  { %v309_v14 = vpack.c.bf16 %v300_v12, %v299_v11  ;;  %v1095_v12 = vmov 0.0  }
 0x120   :  { %926 = vmatprep.subr.bf16.mxu1 %v1095_v12 }
 0x121   :  { %890 = vmatprep.mubr.bf16.mxu1 %v309_v14  ;;  %v782_v14 = vld [vmem:[%s1205_s6] ss:$0 sm:$0xff] }
 0x122   :  { %891 = vmatmul.mubr.bf16.gmra.mxu1 %v310_v15 }
 0x123   :  { %942 = vmatprep.mubr.msk.bf16.mxu1 %vm1096_vm1, %v1095_v12 }
 0x1ca   :  { %v880_v19 = vpop.f32.mrf.mxu1 }
 0x1cb   :  { %v425_v25 = vadd.f32 %v880_v19, %v773_v21 }
 0x1cc   :  { %v416_v20 = vpop.f32.mrf.mxu1 }
 0x1cd   :  { %v417_v23 = vadd.f32 %v773_v21, %v416_v20  ;;  %v481_v32 = vmax.f32 %v425_v25, 0.0 }
 0x1ce   :  { %v881_v22 = vpop.f32.mrf.mxu1 }
 0x1cf   :  { %v428_v24 = vadd.f32 %v881_v22, %v773_v21  ;;  %v479_v30 = vmax.f32 %v417_v23, 0.0 }
 0x1d0   :  { %v419_v26 = vpop.f32.mrf.mxu1 }
 0x1d1   :  { %v420_v27 = vadd.f32 %v773_v21, %v419_v26  ;;  %v482_v28 = vmax.f32 %v428_v24, 0.0 }
 0x1d2   :  { %v884_v29 = vpop.f32.mrf.mxu1 }
 0x1d3   :  { %v480_v31 = vmax.f32 %v420_v27, 0.0  ;;  %v496_v35 = vpack.c.bf16 %v482_v28, %v481_v32  ;;  %v441_v39 = vadd.f32 %v884_v29, %v773_v21 }
 0x1d4   :  { %v432_v33 = vpop.f32.mrf.mxu1 }
 0x1d5   :  { %v495_v34 = vpack.c.bf16 %v480_v31, %v479_v30  ;;  %v433_v37 = vadd.f32 %v773_v21, %v432_v33  ;;  %v485_v46 = vmax.f32 %v441_v39, 0.0 }
 0x1d6   :  { %v885_v36 = vpop.f32.mrf.mxu1 }
 0x1d7   :  { %v444_v38 = vadd.f32 %v885_v36, %v773_v21  ;;  %910 = vmatprep.mubr.bf16.mxu0 %v495_v34  ;;  %v483_v44 = vmax.f32 %v433_v37, 0.0 }
 0x1d8   :  { %v435_v40 = vpop.f32.mrf.mxu1  ;;  %911 = vmatmul.mubr.bf16.vlgmr.msra.gmra.mxu0 %v496_v35 }
 0x1d9   :  { %v436_v41 = vadd.f32 %v773_v21, %v435_v40  ;;  %v486_v42 = vmax.f32 %v444_v38, 0.0 }
 0x1da   :  { %v888_v43 = vpop.f32.mrf.mxu1 }
 0x1db   :  { %v484_v45 = vmax.f32 %v436_v41, 0.0  ;;  %v498_v49 = vpack.c.bf16 %v486_v42, %v485_v46  ;;  %v457_v53 = vadd.f32 %v888_v43, %v773_v21 }
 0x1dc   :  { %v448_v47 = vpop.f32.mrf.mxu1 }
 0x1dd   :  { %v497_v48 = vpack.c.bf16 %v484_v45, %v483_v44  ;;  %v449_v51 = vadd.f32 %v773_v21, %v448_v47  ;;  %v489_v60 = vmax.f32 %v457_v53, 0.0 }
 0x1de   :  { %v889_v50 = vpop.f32.mrf.mxu1 }
 0x1df   :  { %v460_v52 = vadd.f32 %v889_v50, %v773_v21  ;;  %914 = vmatprep.mubr.bf16.mxu0 %v497_v48  ;;  %v487_v58 = vmax.f32 %v449_v51, 0.0 }
 0x1e0   :  { %v451_v54 = vpop.f32.mrf.mxu1  ;;  %915 = vmatmul.mubr.bf16.gmra.mxu0 %v498_v49 }
 0x1e1   :  { %v452_v55 = vadd.f32 %v773_v21, %v451_v54  ;;  %v490_v56 = vmax.f32 %v460_v52, 0.0 }
 0x1e2   :  { %v892_v57 = vpop.f32.mrf.mxu1 }
 0x1e3   :  { %v488_v59 = vmax.f32 %v452_v55, 0.0  ;;  %v500_v63 = vpack.c.bf16 %v490_v56, %v489_v60  ;;  %v473_v3 = vadd.f32 %v892_v57, %v773_v21 }
 0x1e4   :  { %v464_v61 = vpop.f32.mrf.mxu1 }
 0x1e5   :  { %v499_v62 = vpack.c.bf16 %v488_v59, %v487_v58  ;;  %v465_v1 = vadd.f32 %v773_v21, %v464_v61  ;;  %v493_v9 = vmax.f32 %v473_v3, 0.0 }
 0x1e6   :  { %v893_v0 = vpop.f32.mrf.mxu1 }
 0x1e7   :  { %v476_v2 = vadd.f32 %v893_v0, %v773_v21  ;;  %918 = vmatprep.mubr.bf16.mxu0 %v499_v62  ;;  %v491_v7 = vmax.f32 %v465_v1, 0.0 }
 0x1e8   :  { %v467_v4 = vpop.f32.mrf.mxu1  ;;  %919 = vmatmul.mubr.bf16.gmra.mxu0 %v500_v63 }
 0x1e9   :  { %v468_v5 = vadd.f32 %v773_v21, %v467_v4  ;;  %v494_v6 = vmax.f32 %v476_v2, 0.0 }
 0x1eb   :  { %v492_v8 = vmax.f32 %v468_v5, 0.0  ;;  %v502_v11 = vpack.c.bf16 %v494_v6, %v493_v9  ;;  %v687_v6 = vld [vmem:[%s1206_s7] sm:$0x1] }
 0x1ed   :  { %v501_v10 = vpack.c.bf16 %v492_v8, %v491_v7 }
 0x1ef   :  { %922 = vmatprep.mubr.bf16.mxu0 %v501_v10 }
 0x1f0   :  { %923 = vmatmul.mubr.bf16.gmra.mxu0 %v502_v11 }
 0x298   :  { %v912_v13 = vpop.f32.mrf.mxu0 }
 0x299   :  { %v617_v16 = vadd.f32 %v912_v13, %v782_v14 }
 0x29a   :  { %v608_v15 = vpop.f32.mrf.mxu0 }
 0x29b   :  { %v609_v18 = vadd.f32 %v782_v14, %v608_v15  ;;  %v673_v21 = vmax.f32 %v617_v16, 0.0 }
 0x29c   :  { %v913_v17 = vpop.f32.mrf.mxu0 }
 0x29d   :  { %v620_v19 = vadd.f32 %v913_v17, %v782_v14  ;;  %v671_v25 = vmax.f32 %v609_v18, 0.0 }
 0x29e   :  { %v611_v20 = vpop.f32.mrf.mxu0 }
 0x29f   :  { %v674_v22 = vmax.f32 %v620_v19, 0.0  ;;  %v612_v23 = vadd.f32 %v782_v14, %v611_v20 }
 0x2a0   :  { %v916_v24 = vpop.f32.mrf.mxu0 }
 0x2a1   :  { %v689_v26 = vpack.c.bf16 %v674_v22, %v673_v21  ;;  %v672_v27 = vmax.f32 %v612_v23, 0.0  ;;  %v633_v61 = vadd.f32 %v916_v24, %v782_v14 }
 0x2a2   :  { %v624_v28 = vpop.f32.mrf.mxu0 }
 0x2a3   :  { %v688_v29 = vpack.c.bf16 %v672_v27, %v671_v25  ;;  %v677_v63 = vmax.f32 %v633_v61, 0.0  ;;  %v625_v2 = vadd.f32 %v782_v14, %v624_v28 }
 0x2a4   :  { %v917_v30 = vpop.f32.mrf.mxu0 }
 0x2a5   :  { %v636_v59 = vadd.f32 %v917_v30, %v782_v14  ;;  %v675_v4 = vmax.f32 %v625_v2, 0.0 }
 0x2a6   :  { %v627_v31 = vpop.f32.mrf.mxu0 }
 0x2a7   :  { %v678_v62 = vmax.f32 %v636_v59, 0.0  ;;  %v628_v1 = vadd.f32 %v782_v14, %v627_v31 }
 0x2a8   :  { %v920_v32 = vpop.f32.mrf.mxu0 }
 0x2a9   :  { %v649_v51 = vadd.f32 %v920_v32, %v782_v14  ;;  %v691_v0 = vpack.c.bf16 %v678_v62, %v677_v63  ;;  %v676_v3 = vmax.f32 %v628_v1, 0.0 }
 0x2aa   :  { %v640_v33 = vpop.f32.mrf.mxu0 }
 0x2ab   :  { %v681_v53 = vmax.f32 %v649_v51, 0.0  ;;  %v641_v56 = vadd.f32 %v782_v14, %v640_v33  ;;  %v690_v5 = vpack.c.bf16 %v676_v3, %v675_v4 }
 0x2ac   :  { %v921_v34 = vpop.f32.mrf.mxu0 }
 0x2ad   :  { %v652_v49 = vadd.f32 %v921_v34, %v782_v14  ;;  %v679_v58 = vmax.f32 %v641_v56, 0.0 }
 0x2ae   :  { %v643_v35 = vpop.f32.mrf.mxu0 }
 0x2af   :  { %v682_v52 = vmax.f32 %v652_v49, 0.0  ;;  %v644_v55 = vadd.f32 %v782_v14, %v643_v35 }
 0x2b0   :  { %v924_v36 = vpop.f32.mrf.mxu0 }
 0x2b1   :  { %v665_v38 = vadd.f32 %v924_v36, %v782_v14  ;;  %v693_v54 = vpack.c.bf16 %v682_v52, %v681_v53  ;;  %v680_v57 = vmax.f32 %v644_v55, 0.0 }
 0x2b2   :  { %v656_v37 = vpop.f32.mrf.mxu0 }
 0x2b3   :  { %v685_v42 = vmax.f32 %v665_v38, 0.0  ;;  %v657_v46 = vadd.f32 %v782_v14, %v656_v37  ;;  %v692_v60 = vpack.c.bf16 %v680_v57, %v679_v58 }
 0x2b4   :  { %v925_v39 = vpop.f32.mrf.mxu0 }
 0x2b5   :  { %v668_v40 = vadd.f32 %v925_v39, %v782_v14  ;;  %v683_v48 = vmax.f32 %v657_v46, 0.0 }
 0x2b6   :  { %v659_v41 = vpop.f32.mrf.mxu0 }
 0x2b7   :  { %v686_v43 = vmax.f32 %v668_v40, 0.0  ;;  %v660_v45 = vadd.f32 %v782_v14, %v659_v41 }
 0x2b9   :  { %v695_v44 = vpack.c.bf16 %v686_v43, %v685_v42  ;;  %v684_v47 = vmax.f32 %v660_v45, 0.0 }
 0x2bb   :  { %927 = vmatpush3.bf16.xpose.msra.mxu1 %v695_v44  ;;  %v694_v50 = vpack.c.bf16 %v684_v47, %v683_v48 }
 0x2bc   :  { %928 = vmatprep.subr.bf16.mxu1 %v1095_v12 }
 0x2c3   :  { %929 = vmatpush3.bf16.xpose.msra.mxu1 %v694_v50 }
 0x2c4   :  { %930 = vmatprep.subr.bf16.mxu1 %v1095_v12 }
 0x2cb   :  { %931 = vmatpush3.bf16.xpose.msra.mxu1 %v693_v54 }
 0x2cc   :  { %932 = vmatprep.subr.bf16.mxu1 %v1095_v12 }
 0x2d3   :  { %933 = vmatpush3.bf16.xpose.msra.mxu1 %v692_v60 }
 0x2d4   :  { %934 = vmatprep.subr.bf16.mxu1 %v1095_v12 }
 0x2db   :  { %935 = vmatpush3.bf16.xpose.msra.mxu1 %v691_v0 }
 0x2dc   :  { %936 = vmatprep.subr.bf16.mxu1 %v1095_v12 }
 0x2e3   :  { %937 = vmatpush3.bf16.xpose.msra.mxu1 %v690_v5 }
 0x2e4   :  { %938 = vmatprep.subr.bf16.mxu1 %v1095_v12 }
 0x2eb   :  { %939 = vmatpush3.bf16.xpose.msra.mxu1 %v689_v26 }
 0x2ec   :  { %940 = vmatprep.subr.bf16.mxu1 %v1095_v12 }
 0x2f3   :  { %941 = vmatpush3.bf16.xpose.msra.mxu1 %v688_v29 }
 0x2fa   :  { %943 = vmatmul.mubr.bf16.vlgmr.msra.gmra.mxu1 %v687_v6 }
 0x3ba   :  { %v730_v7 = vpop.f32.mrf.mxu1 }
 0x3bb   :  { %736 = vst [vmem:[#allocation10] sm:$0x1] %v730_v7 }
 0x3bc   :  { %v944_v8 = vpop.f32.mrf.mxu1 }
 0x3bd   :  { %1072 = shalt.err (!%p1069_p10)
}
 0x3be   :  { %746 = dma.vmem_to_hbm [thread:$0]  %s744_s30, 16, %s1207_s8, [#allocation4]   ;;  %v733_v9 = vpop.f32.mrf.mxu1 }
 0x3c0   :  { %v945_v10 = vpop.f32.mrf.mxu1 }
 0x3c1   :  { %1087 = dma.done.wait [#allocation4], 16  }
 0x3c2   :  { %1088 = vsyncadd [#allocation4], 4294967280 }
 0x3c3   :  { %750 = vsyncpa [#allocation3], 1 }
 0x3c4   :  { %751 = vsyncpa [#allocation6], 1 }
 0x3c5   :  { %752 = vsyncpa [#allocation9], 1 }
 0x3c6   :  { %753 = vsyncpa [#allocation4], 1 }

</bundles_post_ra>
